<compile_context>
chip_gen: v7x
topology: tpu7x:2x2x1
jax: 0.10.0
libtpu: 0.0.40
codegen_flags: <defaults>
</compile_context>

<pallas_src>
import functools

import jax
import jax.numpy as jnp
from jax import lax
from jax.experimental import pallas as pl
from jax.experimental.pallas import tpu as pltpu


_VMEM_LIMIT_BYTES = 64 * 1024 * 1024   # explicit scoped-VMEM budget (<= v7x physical)
_INPUT_TILE_BYTES = 8 * 1024 * 1024    # target per-buffer input tile (x2 for double-buffer)
_MAX_T_TILE = 512                      # >=512-row tiles ~ HBM roofline on v6e


# ------------------------------ tile selection -------------------------------

def _largest_divisor(n, cap, multiple_of=1):
    cap = max(1, min(cap, n))
    for d in range(cap, 0, -1):
        if n % d == 0 and d % multiple_of == 0:
            return d
    return None


def _choose_tiles(B, T, D, itemsize):
    # Output block is (BB, D): its second-to-last dim must be a multiple of 8
    # or equal to the full batch, so pack 8 rows when possible, else whole B.
    BB = 8 if B % 8 == 0 else B
    # T tile: multiple of 8 (16 for 2-byte dtypes, sublane packing), sized so a
    # double-buffered input tile stays well under the VMEM budget.
    align = max(8, 32 // itemsize)
    cap = max(align, min(_MAX_T_TILE, _INPUT_TILE_BYTES // max(1, BB * D * itemsize)))
    tT = _largest_divisor(T, cap, align)
    if tT is None:
        tT = T      # full-T block is always a legal block shape
    return BB, tT


def _compiler_params():
    return pltpu.CompilerParams(
        dimension_semantics=("parallel", "arbitrary"),
        vmem_limit_bytes=_VMEM_LIMIT_BYTES,
    )


# ----------------------------- Pallas kernels ------------------------------

def _mean_kernel(x_ref, o_ref, acc_ref, *, inv_t):
    # x_ref: (BB, tT, D) ; o_ref: (BB, D) ; acc_ref: (BB, D) f32 scratch
    t = pl.program_id(1)

    @pl.when(t == 0)
    def _init():
        acc_ref[...] = jnp.zeros_like(acc_ref)

    acc_ref[...] += jnp.sum(x_ref[...].astype(jnp.float32), axis=1)

    @pl.when(t == pl.num_programs(1) - 1)
    def _finalize():
        o_ref[...] = (acc_ref[...] * inv_t).astype(o_ref.dtype)


def _max_kernel(x_ref, v_ref, i_ref, vmax_ref, idx_ref):
    # x_ref: (BB, tT, D) ; v_ref/i_ref: (BB, D) ; scratch: running max / argmax.
    t = pl.program_id(1)
    tT = x_ref.shape[1]

    @pl.when(t == 0)
    def _init():
        vmax_ref[...] = jnp.full_like(vmax_ref, -jnp.inf)
        idx_ref[...] = jnp.zeros_like(idx_ref)

    x = x_ref[...].astype(jnp.float32)                              # (BB, tT, D)
    tile_max = jnp.max(x, axis=1, keepdims=True)                    # (BB, 1, D)
    # First occurrence of the tile max within this tile (global T index).
    # TODO(synk): like the torch reference comparison, this assumes finite inputs
    # (NaNs would make x == tile_max false everywhere).
    iota = lax.broadcasted_iota(jnp.int32, x.shape, 1) + t * tT
    first_in_tile = jnp.min(
        jnp.where(x == tile_max, iota, jnp.int32(2**30)), axis=1)   # (BB, D)
    tile_max2 = tile_max[:, 0, :]                                   # (BB, D)

    better = tile_max2 > vmax_ref[...]          # strict '>' keeps first occurrence
    idx_ref[...] = jnp.where(better, first_in_tile, idx_ref[...])
    vmax_ref[...] = jnp.where(better, tile_max2, vmax_ref[...])

    @pl.when(t == pl.num_programs(1) - 1)
    def _finalize():
        v_ref[...] = vmax_ref[...].astype(v_ref.dtype)
        i_ref[...] = idx_ref[...]


def _self_attn_kernel(x_ref, w_ref, b_ref, o_ref, m_ref, l_ref, acc_ref):
    # SelfAttentionPooling with an online softmax over T tiles:
    #   score = x @ W + b ; att = softmax(score) over T ; out = sum_t att_t * x_t
    # x_ref: (BB, tT, D) ; w_ref: (1, D) VMEM ; b_ref: (1,) SMEM ; o_ref: (BB, D)
    # scratch: m_ref/l_ref (BB, 1) f32 running max / denom ; acc_ref (BB, D) f32.
    t = pl.program_id(1)

    @pl.when(t == 0)
    def _init():
        m_ref[...] = jnp.full_like(m_ref, -jnp.inf)
        l_ref[...] = jnp.zeros_like(l_ref)
        acc_ref[...] = jnp.zeros_like(acc_ref)

    xf = x_ref[...].astype(jnp.float32)                             # (BB, tT, D)
    w = w_ref[...].astype(jnp.float32)                              # (1, D)
    bias = b_ref[0]                                                 # SMEM scalar

    # Per-row attention scores for this tile.
    s = jnp.sum(xf * w[None, :, :], axis=-1) + bias                 # (BB, tT)

    # Online-softmax update in f32.
    m_tile = jnp.max(s, axis=1, keepdims=True)                      # (BB, 1)
    m_new = jnp.maximum(m_ref[...], m_tile)                         # (BB, 1)
    alpha = jnp.exp(m_ref[...] - m_new)                             # (BB, 1)
    p = jnp.exp(s - m_new)                                          # (BB, tT)
    l_ref[...] = alpha * l_ref[...] + jnp.sum(p, axis=1, keepdims=True)
    # Weighted sum of this tile on the MXU: (BB,1,tT) @ (BB,tT,D) -> (BB,1,D)
    upd = jnp.einsum('bqt,btd->bqd', p[:, None, :], xf,
                     preferred_element_type=jnp.float32)
    acc_ref[...] = alpha * acc_ref[...] + upd[:, 0, :]
    m_ref[...] = m_new

    @pl.when(t == pl.num_programs(1) - 1)
    def _finalize():
        # approx=False keeps ~1e-7 rel error; approx=True would move this to EUP.
        inv_l = pl.reciprocal(l_ref[...], approx=False)
        o_ref[...] = (acc_ref[...] * inv_l).astype(o_ref.dtype)


# ------------------------------- wrappers -----------------------------------

def mean_pool(mels):
    B, T, D = mels.shape
    itemsize = jnp.dtype(mels.dtype).itemsize
    BB, tT = _choose_tiles(B, T, D, itemsize)
    grid = (B // BB, T // tT)
    kernel = functools.partial(_mean_kernel, inv_t=float(1.0 / T))
    return pl.pallas_call(
        kernel,
        grid=grid,
        in_specs=[pl.BlockSpec((BB, tT, D), lambda b, t: (b, t, 0))],
        out_specs=pl.BlockSpec((BB, D), lambda b, t: (b, 0)),
        out_shape=jax.ShapeDtypeStruct((B, D), mels.dtype),
        scratch_shapes=[pltpu.VMEM((BB, D), jnp.float32)],
        compiler_params=_compiler_params(),
        cost_estimate=pl.CostEstimate(
            flops=int(B * T * D + B * D),
            transcendentals=0,
            bytes_accessed=int(B * T * D * itemsize + B * D * itemsize)),
    )(mels)


def max_pool(mels):
    B, T, D = mels.shape
    itemsize = jnp.dtype(mels.dtype).itemsize
    BB, tT = _choose_tiles(B, T, D, itemsize)
    grid = (B // BB, T // tT)
    vals, idxs = pl.pallas_call(
        _max_kernel,
        grid=grid,
        in_specs=[pl.BlockSpec((BB, tT, D), lambda b, t: (b, t, 0))],
        out_specs=(pl.BlockSpec((BB, D), lambda b, t: (b, 0)),
                   pl.BlockSpec((BB, D), lambda b, t: (b, 0))),
        out_shape=(jax.ShapeDtypeStruct((B, D), mels.dtype),
                   jax.ShapeDtypeStruct((B, D), jnp.int32)),
        scratch_shapes=[pltpu.VMEM((BB, D), jnp.float32),
                        pltpu.VMEM((BB, D), jnp.int32)],
        compiler_params=_compiler_params(),
        cost_estimate=pl.CostEstimate(
            flops=int(3 * B * T * D),
            transcendentals=0,
            bytes_accessed=int(B * T * D * itemsize + B * D * (itemsize + 4))),
    )(mels)
    # torch.Tensor.max(dim=1) returns (values, indices)
    return vals, idxs


def self_attention_pool(mels, w, b):
    # w: (D,) attention projection weight, b: scalar bias (nn.Linear(d_model, 1))
    B, T, D = mels.shape
    itemsize = jnp.dtype(mels.dtype).itemsize
    BB, tT = _choose_tiles(B, T, D, itemsize)
    grid = (B // BB, T // tT)
    w2 = jnp.asarray(w, jnp.float32).reshape(1, D)
    b2 = jnp.asarray(b, jnp.float32).reshape(1)
    return pl.pallas_call(
        _self_attn_kernel,
        grid=grid,
        in_specs=[
            pl.BlockSpec((BB, tT, D), lambda bi, ti: (bi, ti, 0)),
            pl.BlockSpec((1, D), lambda bi, ti: (0, 0)),
            pl.BlockSpec(memory_space=pltpu.MemorySpace.SMEM),
        ],
        out_specs=pl.BlockSpec((BB, D), lambda bi, ti: (bi, 0)),
        out_shape=jax.ShapeDtypeStruct((B, D), mels.dtype),
        scratch_shapes=[pltpu.VMEM((BB, 1), jnp.float32),   # running max
                        pltpu.VMEM((BB, 1), jnp.float32),   # running denominator
                        pltpu.VMEM((BB, D), jnp.float32)],  # running numerator
        compiler_params=_compiler_params(),
        cost_estimate=pl.CostEstimate(
            flops=int(4 * B * T * D),
            transcendentals=int(2 * B * T),
            bytes_accessed=int(B * T * D * itemsize + B * D * itemsize + D * 4)),
    )(mels, w2, b2)


class Pooling:
    """JAX/Pallas port of HW04 Pooling (types: 'mean', 'max', 'self_attention')."""

    def __init__(self, d_model, *, type, key=None):
        self.type = type
        if type == "self_attention":
            # nn.Linear(d_model, 1): weight (1, d_model), bias (1,)
            key = jax.random.PRNGKey(0) if key is None else key
            kw, kb = jax.random.split(key)
            bound = 1.0 / (d_model ** 0.5)
            self.w = jax.random.uniform(kw, (d_model,), jnp.float32, -bound, bound)
            self.b = jax.random.uniform(kb, (), jnp.float32, -bound, bound)
        elif type in ("mean", "max"):
            pass
        else:
            raise NotImplementedError(f"Pooling type `{type}` not implemented.")

    def __call__(self, mels):
        if self.type == "mean":
            return mean_pool(mels)
        elif self.type == "max":
            return max_pool(mels)  # (values, indices), like torch .max(dim=1)
        elif self.type == "self_attention":
            return self_attention_pool(mels, self.w, self.b)


# --------------------------------- main --------------------------------------

if __name__ == "__main__":
    B, T, D = 2, 8, 32
    key = jax.random.PRNGKey(0)
    mels = jax.random.normal(key, (B, T, D), jnp.float32)

    # mean
    pool_mean = Pooling(D, type="mean")
    out_mean = jax.block_until_ready(pool_mean(mels))
    assert out_mean.shape == (B, D)
    assert jnp.allclose(out_mean, mels.mean(axis=1), atol=1e-5)

    # max (values, indices)
    pool_max = Pooling(D, type="max")
    vals, idxs = pool_max(mels)
    vals = jax.block_until_ready(vals)
    idxs = jax.block_until_ready(idxs)
    assert vals.shape == (B, D) and idxs.shape == (B, D)
    assert jnp.allclose(vals, mels.max(axis=1), atol=1e-5)
    assert jnp.array_equal(idxs, jnp.argmax(mels, axis=1).astype(jnp.int32))

    # self-attention pooling
    pool_sa = Pooling(D, type="self_attention", key=jax.random.PRNGKey(0))
    out_sa = jax.block_until_ready(pool_sa(mels))
    assert out_sa.shape == (B, D)
    scores_ref = mels @ pool_sa.w + pool_sa.b                     # (B, T)
    att_ref = jax.nn.softmax(scores_ref, axis=1)[..., None]       # (B, T, 1)
    ref_sa = jnp.sum(mels * att_ref, axis=1)
    assert jnp.allclose(out_sa, ref_sa, atol=1e-5)

    print("KERNEL_OK")
</pallas_src>

<mosaic_0001>
module attributes {stable_mosaic.version = 11 : i64} {
  func.func @_mean_kernel(%arg0: i32, %arg1: i32, %arg2: memref<2x8x32xf32, #tpu.memory_space<vmem>>, %arg3: memref<2x32xf32, #tpu.memory_space<vmem>>, %arg4: memref<2x32xf32, #tpu.memory_space<vmem>>) attributes {dimension_semantics = [#tpu.dimension_semantics<parallel>, #tpu.dimension_semantics<arbitrary>], iteration_bounds = array<i64: 1, 1>, scalar_prefetch = 0 : i64, scratch_operands = 1 : i64, tpu.core_type = #tpu.core_type<tc>, window_params = [{transform_indices = @transform_0, window_bounds = array<i64: 2, 8, 32>}, {transform_indices = @transform_1, window_bounds = array<i64: 2, 32>}]} {
    %c0_i32 = arith.constant 0 : i32
    %0 = arith.cmpi eq, %arg1, %c0_i32 : i32
    %1 = arith.extui %0 : i1 to i32
    %c0_i32_0 = arith.constant 0 : i32
    %2 = arith.cmpi ne, %1, %c0_i32_0 : i32
    scf.if %2 {
      %cst_9 = arith.constant 0.000000e+00 : f32
      %11 = vector.broadcast %cst_9 : f32 to vector<2x32xf32>
      %c0_10 = arith.constant 0 : index
      %c0_11 = arith.constant 0 : index
      %12 = vector.load %arg4[%c0_10, %c0_11] : memref<2x32xf32, #tpu.memory_space<vmem>>, vector<2x32xf32>
      tpu.vector_store %arg4[%c0_10, %c0_11], %11 {strides = array<i32>} : memref<2x32xf32, #tpu.memory_space<vmem>>, vector<2x32xf32>,
    } else {
    }
    %c0 = arith.constant 0 : index
    %c0_1 = arith.constant 0 : index
    %3 = vector.load %arg4[%c0, %c0_1] : memref<2x32xf32, #tpu.memory_space<vmem>>, vector<2x32xf32>
    %c0_2 = arith.constant 0 : index
    %c0_3 = arith.constant 0 : index
    %c0_4 = arith.constant 0 : index
    %4 = vector.load %arg2[%c0_2, %c0_3, %c0_4] : memref<2x8x32xf32, #tpu.memory_space<vmem>>, vector<2x8x32xf32>
    %cst = arith.constant dense<0.000000e+00> : vector<2x32xf32>
    %5 = vector.multi_reduction <add>, %4, %cst [1] : vector<2x8x32xf32> to vector<2x32xf32>
    %6 = arith.addf %3, %5 : vector<2x32xf32>
    %c0_5 = arith.constant 0 : index
    %c0_6 = arith.constant 0 : index
    %7 = vector.load %arg4[%c0_5, %c0_6] : memref<2x32xf32, #tpu.memory_space<vmem>>, vector<2x32xf32>
    tpu.vector_store %arg4[%c0_5, %c0_6], %6 {strides = array<i32>} : memref<2x32xf32, #tpu.memory_space<vmem>>, vector<2x32xf32>,
    %c0_i32_7 = arith.constant 0 : i32
    %8 = arith.cmpi eq, %arg1, %c0_i32_7 : i32
    %9 = arith.extui %8 : i1 to i32
    %c0_i32_8 = arith.constant 0 : i32
    %10 = arith.cmpi ne, %9, %c0_i32_8 : i32
    scf.if %10 {
      %c0_9 = arith.constant 0 : index
      %c0_10 = arith.constant 0 : index
      %11 = vector.load %arg4[%c0_9, %c0_10] : memref<2x32xf32, #tpu.memory_space<vmem>>, vector<2x32xf32>
      %cst_11 = arith.constant 1.250000e-01 : f32
      %12 = vector.broadcast %cst_11 : f32 to vector<2x32xf32>
      %13 = arith.mulf %11, %12 : vector<2x32xf32>
      %c0_12 = arith.constant 0 : index
      %c0_13 = arith.constant 0 : index
      %14 = vector.load %arg3[%c0_12, %c0_13] : memref<2x32xf32, #tpu.memory_space<vmem>>, vector<2x32xf32>
      tpu.vector_store %arg3[%c0_12, %c0_13], %13 {strides = array<i32>} : memref<2x32xf32, #tpu.memory_space<vmem>>, vector<2x32xf32>,
    } else {
    }
    return
  }
  func.func @transform_0(%arg0: i32, %arg1: i32) -> (i32, i32, i32) {
    %c0_i32 = arith.constant 0 : i32
    %c0_i32_0 = arith.constant 0 : i32
    return %arg0, %arg1, %c0_i32 : i32, i32, i32
  }
  func.func @transform_1(%arg0: i32, %arg1: i32) -> (i32, i32) {
    %c0_i32 = arith.constant 0 : i32
    %c0_i32_0 = arith.constant 0 : i32
    return %arg0, %c0_i32 : i32, i32
  }
}

</mosaic_0001>

<bundles_post_ra>
// kernel: tpu_custom_call.1
= control target key start
LH: loop header
LB: loop body
LE: loop exit
PB: predicated region body
PF: predicated region fallthrough
CT: control target
= control target key end

     0   :  { %6 = vsyncpa [#allocation4], 0  ;;  %s171_s0 = inlined_call_operand.hbm [shape: f32[2,8,32], index: 0, kind: input, shape index: {}]   ;;  %s172_s1 = inlined_call_operand.hbm [shape: f32[2,32], index: 1, kind: output, shape index: {}]  }
   0x1   :  { %7 = vsyncpa [#allocation5], 0  ;;  %s129_s6 = smov [#allocation3]   ;;  %s81_s10 = scalar_lea.hbm %s171_s0, 256 }
   0x2   :  { %s13_s7 = sshll.u32 %s129_s6, 4  ;;  %p82_p0 = scmp.ne.s32.totalorder %s171_s0, %s81_s10  ;;  %s14_s7 = int_to_ptr.vmem [resolvable:$true] %s13_s7 }
   0x3   :  { %p85_p1 = scmp.lt.u32.totalorder %s81_s10, %s171_s0 }
   0x5   :  { %p87_p2 = pnand %p85_p1, %p82_p0 }
   0x7   :  { %90 = shalt.err (!%p87_p2)
}
   0x8   :  { %s91_s15 = scalar_lea.vmem %s14_s7, 256  ;;  %p96_p4 = scmp.lt.s32.totalorder %s14_s7, %s14_s7 }
   0x9   :  { %p92_p3 = scmp.ne.s32.totalorder %s14_s7, %s91_s15  ;;  %p97_p5 = scmp.lt.s32.totalorder %s91_s15, %s91_s15 }
   0xb   :  { %p98_p6 = por %p97_p5, %p96_p4 }
   0xd   :  { %p99_p7 = pnand %p98_p6, %p92_p3 }
   0xf   :  { %102 = shalt.err (!%p99_p7)
}
  0x10   :  { %s130_s16 = smov 128   ;;  %s131_s17 = smov 8  }
  0x11   :  { %19 = dma.hbm_to_vmem [thread:$0]  %s171_s0, 256, %s14_s7, [#allocation4], %s130_s16, %s130_s16, %s131_s17  }
  0x12   :  { %125 = dma.done.wait [#allocation4], 256  }
  0x13   :  { %126 = vsyncadd [#allocation4], 4294967040  ;;  %vm27_vm0 = vcmask 254976   ;;  %v132_v0 = vmov 0.0   ;;  %vm32_vm1 = vcmask 261120   ;;  %v30_v1 = vld [vmem:[#allocation3] sm:$0xff] }
  0x14   :  { %28 = vst.msk [vmem:[#allocation2] sm:$0x3] %vm27_vm0, %v132_v0  ;;  %v31_v2 = vld [vmem:[#allocation3 + $0x8] sm:$0xff]  ;;  %v33_v3 = vsel %vm32_vm1, %v30_v1, 0.0  ;;  %vm49_vm2 = vcmask 1041409   ;;  %s133_s0 = smov [#allocation6]  }
  0x15   :  { %v40_v4 = vsel %vm32_vm1, %v31_v2, 0.0  ;;  %v34_v5 = vrot.slane %v33_v3, 4  ;;  %s67_s20 = sshll.u32 %s133_s0, 4  ;;  %s68_s20 = int_to_ptr.vmem [resolvable:$true] %s67_s20 }
  0x16   :  { %v41_v6 = vrot.slane %v40_v4, 4  ;;  %s103_s21 = scalar_lea.vmem %s68_s20, 32  ;;  %p108_p9 = scmp.lt.s32.totalorder %s68_s20, %s68_s20 }
  0x17   :  { %v35_v7 = vadd.f32 %v34_v5, %v33_v3  ;;  %p104_p8 = scmp.ne.s32.totalorder %s68_s20, %s103_s21  ;;  %p109_p10 = scmp.lt.s32.totalorder %s103_s21, %s103_s21 }
  0x18   :  { %v42_v8 = vadd.f32 %v41_v6, %v40_v4 }
  0x19   :  { %v36_v9 = vrot.slane %v35_v7, 2  ;;  %p110_p11 = por %p109_p10, %p108_p9 }
  0x1a   :  { %v43_v10 = vrot.slane %v42_v8, 2 }
  0x1b   :  { %v37_v11 = vadd.f32 %v36_v9, %v35_v7  ;;  %v29_v15 = vld [vmem:[#allocation2] sm:$0x3]  ;;  %p111_p12 = pnand %p110_p11, %p104_p8 }
  0x1c   :  { %v44_v12 = vadd.f32 %v43_v10, %v42_v8 }
  0x1d   :  { %v38_v13 = vrot.slane %v37_v11, 1 }
  0x1e   :  { %v45_v14 = vrot.slane %v44_v12, 1 }
  0x1f   :  { %v39_v16 = vadd.f32 %v38_v13, %v37_v11 }
  0x20   :  { %v46_v17 = vadd.f32 %v45_v14, %v44_v12 }
  0x22   :  { %v50_v18 = vsel %vm49_vm2, %v46_v17, %v39_v16 }
  0x23   :  { %v52_v19 = vadd.f32 %v50_v18, %v29_v15 }
  0x25   :  { %54 = vst.msk [vmem:[#allocation2] sm:$0x3] %vm27_vm0, %v52_v19 }
  0x2c   :  { %v58_v20 = vld [vmem:[#allocation2] sm:$0x3] }
  0x2d   :  { %v59_v21 = vmul.f32 0.125, %v58_v20 }
  0x2f   :  { %60 = vst.msk [vmem:[#allocation6] sm:$0x3] %vm27_vm0, %v59_v21 }
  0x30   :  { %114 = shalt.err (!%p111_p12)
}
  0x31   :  { %s115_s24 = scalar_lea.hbm %s172_s1, 32 }
  0x32   :  { %p116_p13 = scmp.ne.s32.totalorder %s172_s1, %s115_s24  ;;  %p119_p0 = scmp.lt.u32.totalorder %s115_s24, %s172_s1 }
  0x34   :  { %p121_p1 = pnand %p119_p0, %p116_p13 }
  0x36   :  { %124 = shalt.err (!%p121_p1)
}
  0x37   :  { %70 = dma.vmem_to_hbm [thread:$0]  %s68_s20, 32, %s172_s1, [#allocation5]  }
  0x38   :  { %127 = dma.done.wait [#allocation5], 32  }
  0x39   :  { %128 = vsyncadd [#allocation5], 4294967264 }
  0x3a   :  { %74 = vsyncpa [#allocation4], 1 }
  0x3b   :  { %75 = vsyncpa [#allocation5], 1 }

</bundles_post_ra>
